<compile_context>
chip_gen: v5e
topology: v5e:2x2
jax: 0.10.0
libtpu: 0.0.40
codegen_flags: <defaults>
</compile_context>

<pallas_src>
import jax
import jax.numpy as jnp
from jax.experimental import pallas as pl
from jax.experimental.pallas import tpu as pltpu

LANE = 128
SUBLANE = 8


def _round_up(x, m):
    return (x + m - 1) // m * m


def value_network_kernel(
    x_ref, g_ref,                 # [TB, F_pad] activations (f32)
    filmw_ref, filmb_ref,         # fused FiLM weights [F_pad, 4F_pad] bf16, bias [1, 4F_pad] f32
    w1_ref, b1_ref,               # ff1: [F_pad, F_pad] bf16, [1, F_pad] f32
    w2_ref, b2_ref,               # ff2: [F_pad, H_pad] bf16, [1, H_pad] f32
    w3_ref, b3_ref,               # ff3 as a row: [1, H_pad] f32, [1, 1] f32
    out_ref,                      # [TB, LANE] f32 (lane-dense, value broadcast across lanes)
):
    F = x_ref.shape[-1]

    x = x_ref[...].astype(jnp.float32)           # elementwise math kept in f32 (v5e VPU)
    g = g_ref[...].astype(jnp.bfloat16)          # MXU input in bf16

    # --- fused FiLM projections: one [TB,F] @ [F,4F] matmul, f32 accumulation ---
    film = jnp.dot(g, filmw_ref[...], preferred_element_type=jnp.float32) + filmb_ref[...]
    gamma1 = film[:, 0 * F:1 * F]
    beta1 = film[:, 1 * F:2 * F]
    gamma2 = film[:, 2 * F:3 * F]
    beta2 = film[:, 3 * F:4 * F]

    # --- FiLM block 1 + residual ---
    x = gamma1 * x + beta1 + x
    # --- FiLM block 2 + residual ---
    x = gamma2 * x + beta2 + x

    # --- MLP head: relu(ff1) -> relu(ff2) ---
    h = jnp.dot(x.astype(jnp.bfloat16), w1_ref[...],
                preferred_element_type=jnp.float32) + b1_ref[...]
    h = jnp.maximum(h, 0.0)
    h = jnp.dot(h.astype(jnp.bfloat16), w2_ref[...],
                preferred_element_type=jnp.float32) + b2_ref[...]
    h = jnp.maximum(h, 0.0)

    # --- ff3 (N=1): VPU multiply + lane reduction instead of a 1-wide MXU matmul ---
    val = jnp.sum(h * w3_ref[...], axis=-1, keepdims=True) + b3_ref[...]   # [TB, 1] f32

    # Lane-dense store: broadcast the scalar column across 128 lanes (unmasked vst).
    out_ref[...] = jnp.broadcast_to(val, out_ref.shape).astype(out_ref.dtype)


def value_network_forward(state_emb, goal, params, *, block_b=256):
    B, F = state_emb.shape
    half = F // 2

    F_pad = _round_up(F, LANE)
    H_pad = _round_up(half, LANE)
    if B >= block_b:
        TB = block_b
    else:
        TB = _round_up(B, SUBLANE)
    B_pad = _round_up(B, TB)
    grid = (B_pad // TB,)

    def pad2(a, rows, cols):
        return jnp.pad(a, ((0, rows - a.shape[0]), (0, cols - a.shape[1])))

    # --- pack / pad parameters (zero padding is semantics-preserving) ---
    film_w = jnp.concatenate(
        [pad2(params["film1_gw"], F_pad, F_pad),
         pad2(params["film1_bw"], F_pad, F_pad),
         pad2(params["film2_gw"], F_pad, F_pad),
         pad2(params["film2_bw"], F_pad, F_pad)], axis=1).astype(jnp.bfloat16)
    film_b = jnp.concatenate(
        [pad2(params["film1_gb"], 1, F_pad),
         pad2(params["film1_bb"], 1, F_pad),
         pad2(params["film2_gb"], 1, F_pad),
         pad2(params["film2_bb"], 1, F_pad)], axis=1).astype(jnp.float32)

    w1 = pad2(params["ff1_w"], F_pad, F_pad).astype(jnp.bfloat16)
    b1 = pad2(params["ff1_b"], 1, F_pad).astype(jnp.float32)
    w2 = pad2(params["ff2_w"], F_pad, H_pad).astype(jnp.bfloat16)
    b2 = pad2(params["ff2_b"], 1, H_pad).astype(jnp.float32)
    w3_row = pad2(params["ff3_w"].T, 1, H_pad).astype(jnp.float32)   # [1, H_pad]
    b3 = params["ff3_b"].astype(jnp.float32)                         # [1, 1]

    x_pad = pad2(state_emb.astype(jnp.float32), B_pad, F_pad)
    g_pad = pad2(goal.astype(jnp.float32), B_pad, F_pad)

    flops = 2 * B_pad * (F_pad * 4 * F_pad + F_pad * F_pad + F_pad * H_pad + H_pad)
    bytes_accessed = (
        x_pad.size * 4 + g_pad.size * 4 + film_w.size * 2 + film_b.size * 4 +
        w1.size * 2 + b1.size * 4 + w2.size * 2 + b2.size * 4 +
        w3_row.size * 4 + b3.size * 4 + B_pad * LANE * 4)

    out = pl.pallas_call(
        value_network_kernel,
        out_shape=jax.ShapeDtypeStruct((B_pad, LANE), jnp.float32),
        grid=grid,
        in_specs=[
            pl.BlockSpec((TB, F_pad), lambda i: (i, 0)),          # state_emb tile
            pl.BlockSpec((TB, F_pad), lambda i: (i, 0)),          # goal tile
            pl.BlockSpec((F_pad, 4 * F_pad), lambda i: (0, 0)),   # fused FiLM weight (resident)
            pl.BlockSpec((1, 4 * F_pad), lambda i: (0, 0)),       # fused FiLM bias
            pl.BlockSpec((F_pad, F_pad), lambda i: (0, 0)),       # ff1 W
            pl.BlockSpec((1, F_pad), lambda i: (0, 0)),           # ff1 b
            pl.BlockSpec((F_pad, H_pad), lambda i: (0, 0)),       # ff2 W
            pl.BlockSpec((1, H_pad), lambda i: (0, 0)),           # ff2 b
            pl.BlockSpec((1, H_pad), lambda i: (0, 0)),           # ff3 W (row)
            pl.BlockSpec((1, 1), lambda i: (0, 0)),               # ff3 b
        ],
        out_specs=pl.BlockSpec((TB, LANE), lambda i: (i, 0)),
        compiler_params=pltpu.CompilerParams(
            dimension_semantics=("parallel",),          # v7x: shard batch tiles across 2 TCs
            vmem_limit_bytes=32 * 1024 * 1024),         # explicit budget (safe on v5e/v6e/v7x)
        cost_estimate=pl.CostEstimate(
            flops=flops, transcendentals=0, bytes_accessed=bytes_accessed),
    )(x_pad, g_pad, film_w, film_b, w1, b1, w2, b2, w3_row, b3)

    return out[:B, :1]


def init_params(key, feature_size):
    """Deterministic init mimicking nn.Linear defaults (uniform +- 1/sqrt(fan_in)).
    Weights stored transposed relative to PyTorch: [in_features, out_features]."""
    half = feature_size // 2

    def linear(key, fan_in, fan_out):
        kw, kb = jax.random.split(key)
        bound = 1.0 / jnp.sqrt(fan_in)
        w = jax.random.uniform(kw, (fan_in, fan_out), jnp.float32, -bound, bound)
        b = jax.random.uniform(kb, (1, fan_out), jnp.float32, -bound, bound)
        return w, b

    keys = jax.random.split(key, 7)
    f1gw, f1gb = linear(keys[0], feature_size, feature_size)
    f1bw, f1bb = linear(keys[1], feature_size, feature_size)
    f2gw, f2gb = linear(keys[2], feature_size, feature_size)
    f2bw, f2bb = linear(keys[3], feature_size, feature_size)
    w1, b1 = linear(keys[4], feature_size, feature_size)
    w2, b2 = linear(keys[5], feature_size, half)
    w3, b3 = linear(keys[6], half, 1)
    return {
        "film1_gw": f1gw, "film1_gb": f1gb, "film1_bw": f1bw, "film1_bb": f1bb,
        "film2_gw": f2gw, "film2_gb": f2gb, "film2_bw": f2bw, "film2_bb": f2bb,
        "ff1_w": w1, "ff1_b": b1,
        "ff2_w": w2, "ff2_b": b2,
        "ff3_w": w3, "ff3_b": b3,
    }


def reference_forward(state_emb, goal, p, matmul_dtype=jnp.float32):
    """Pure-JAX reference. matmul_dtype=bf16 mirrors the kernel's MXU input precision
    (f32 accumulation); matmul_dtype=f32 is the exact PyTorch-equivalent math."""
    def mm(a, w):
        return jnp.dot(a.astype(matmul_dtype), w.astype(matmul_dtype),
                       preferred_element_type=jnp.float32)

    x = state_emb.astype(jnp.float32)
    g = goal.astype(jnp.float32)
    gamma1 = mm(g, p["film1_gw"]) + p["film1_gb"]
    beta1 = mm(g, p["film1_bw"]) + p["film1_bb"]
    x = gamma1 * x + beta1 + x
    gamma2 = mm(g, p["film2_gw"]) + p["film2_gb"]
    beta2 = mm(g, p["film2_bw"]) + p["film2_bb"]
    x = gamma2 * x + beta2 + x
    h = jnp.maximum(mm(x, p["ff1_w"]) + p["ff1_b"], 0.0)
    h = jnp.maximum(mm(h, p["ff2_w"]) + p["ff2_b"], 0.0)
    return h @ p["ff3_w"] + p["ff3_b"]            # ff3 kept f32 in the kernel as well


if __name__ == "__main__":
    key = jax.random.PRNGKey(0)
    k_params, k_state, k_goal = jax.random.split(key, 3)

    batch = 8
    feature_size = 32

    params = init_params(k_params, feature_size)
    state_emb = jax.random.normal(k_state, (batch, feature_size), jnp.float32)
    goal = jax.random.normal(k_goal, (batch, feature_size), jnp.float32)

    out = value_network_forward(state_emb, goal, params)
    out = jax.block_until_ready(out)
    assert out.shape == (batch, 1), out.shape

    # Exact-semantics check against a reference using the same bf16 MXU-input precision.
    ref_bf16 = reference_forward(state_emb, goal, params, matmul_dtype=jnp.bfloat16)
    assert jnp.allclose(out, ref_bf16, atol=5e-3, rtol=5e-3), (out, ref_bf16)

    # Sanity check against the full-f32 (PyTorch-equivalent) math with bf16-level tolerance.
    ref_f32 = reference_forward(state_emb, goal, params, matmul_dtype=jnp.float32)
    assert jnp.allclose(out, ref_f32, atol=2e-1, rtol=1e-1), (out, ref_f32)

    print("KERNEL_OK")
</pallas_src>

<mosaic_0001>
module attributes {stable_mosaic.version = 11 : i64} {
  func.func @value_network_kernel(%arg0: i32, %arg1: memref<8x128xf32, #tpu.memory_space<vmem>>, %arg2: memref<8x128xf32, #tpu.memory_space<vmem>>, %arg3: memref<128x512xbf16, #tpu.memory_space<vmem>>, %arg4: memref<1x512xf32, #tpu.memory_space<vmem>>, %arg5: memref<128x128xbf16, #tpu.memory_space<vmem>>, %arg6: memref<1x128xf32, #tpu.memory_space<vmem>>, %arg7: memref<128x128xbf16, #tpu.memory_space<vmem>>, %arg8: memref<1x128xf32, #tpu.memory_space<vmem>>, %arg9: memref<1x128xf32, #tpu.memory_space<vmem>>, %arg10: memref<1x1xf32, #tpu.memory_space<vmem>>, %arg11: memref<8x128xf32, #tpu.memory_space<vmem>>) attributes {dimension_semantics = [#tpu.dimension_semantics<parallel>], iteration_bounds = array<i64: 1>, scalar_prefetch = 0 : i64, scratch_operands = 0 : i64, tpu.core_type = #tpu.core_type<tc>, window_params = [{transform_indices = @transform_0, window_bounds = array<i64: 8, 128>}, {transform_indices = @transform_1, window_bounds = array<i64: 8, 128>}, {pipeline_mode = #tpu.pipeline_mode<synchronous>, transform_indices = @transform_2, window_bounds = array<i64: 128, 512>}, {pipeline_mode = #tpu.pipeline_mode<synchronous>, transform_indices = @transform_3, window_bounds = array<i64: 1, 512>}, {pipeline_mode = #tpu.pipeline_mode<synchronous>, transform_indices = @transform_4, window_bounds = array<i64: 128, 128>}, {pipeline_mode = #tpu.pipeline_mode<synchronous>, transform_indices = @transform_5, window_bounds = array<i64: 1, 128>}, {pipeline_mode = #tpu.pipeline_mode<synchronous>, transform_indices = @transform_6, window_bounds = array<i64: 128, 128>}, {pipeline_mode = #tpu.pipeline_mode<synchronous>, transform_indices = @transform_7, window_bounds = array<i64: 1, 128>}, {pipeline_mode = #tpu.pipeline_mode<synchronous>, transform_indices = @transform_8, window_bounds = array<i64: 1, 128>}, {pipeline_mode = #tpu.pipeline_mode<synchronous>, transform_indices = @transform_9, window_bounds = array<i64: 1, 1>}, {transform_indices = @transform_10, window_bounds = array<i64: 8, 128>}]} {
    %c0 = arith.constant 0 : index
    %c0_0 = arith.constant 0 : index
    %0 = vector.load %arg1[%c0, %c0_0] : memref<8x128xf32, #tpu.memory_space<vmem>>, vector<8x128xf32>
    %c0_1 = arith.constant 0 : index
    %c0_2 = arith.constant 0 : index
    %1 = vector.load %arg2[%c0_1, %c0_2] : memref<8x128xf32, #tpu.memory_space<vmem>>, vector<8x128xf32>
    %2 = arith.truncf %1 : vector<8x128xf32> to vector<8x128xbf16>
    %c0_3 = arith.constant 0 : index
    %c0_4 = arith.constant 0 : index
    %3 = vector.load %arg3[%c0_3, %c0_4] : memref<128x512xbf16, #tpu.memory_space<vmem>>, vector<128x512xbf16>
    %cst = arith.constant dense<0.000000e+00> : vector<8x512xf32>
    %4 = tpu.matmul %2, %3, %cst {dimension_numbers = #tpu.dot_dimension_numbers<[1], [0], [0], [1], [0, 0, 1, 1], [], []>} : vector<8x128xbf16>, vector<128x512xbf16>, vector<8x512xf32> -> vector<8x512xf32>
    %c0_5 = arith.constant 0 : index
    %c0_6 = arith.constant 0 : index
    %5 = vector.load %arg4[%c0_5, %c0_6] : memref<1x512xf32, #tpu.memory_space<vmem>>, vector<1x512xf32>
    %6 = vector.broadcast %5 : vector<1x512xf32> to vector<8x512xf32>
    %7 = arith.addf %4, %6 : vector<8x512xf32>
    %8 = vector.extract_strided_slice %7 {offsets = [0, 0], sizes = [8, 128], strides = [1, 1]} : vector<8x512xf32> to vector<8x128xf32>
    %9 = vector.extract_strided_slice %7 {offsets = [0, 128], sizes = [8, 128], strides = [1, 1]} : vector<8x512xf32> to vector<8x128xf32>
    %10 = vector.extract_strided_slice %7 {offsets = [0, 256], sizes = [8, 128], strides = [1, 1]} : vector<8x512xf32> to vector<8x128xf32>
    %11 = vector.extract_strided_slice %7 {offsets = [0, 384], sizes = [8, 128], strides = [1, 1]} : vector<8x512xf32> to vector<8x128xf32>
    %12 = arith.mulf %8, %0 : vector<8x128xf32>
    %13 = arith.addf %12, %9 : vector<8x128xf32>
    %14 = arith.addf %13, %0 : vector<8x128xf32>
    %15 = arith.mulf %10, %14 : vector<8x128xf32>
    %16 = arith.addf %15, %11 : vector<8x128xf32>
    %17 = arith.addf %16, %14 : vector<8x128xf32>
    %18 = arith.truncf %17 : vector<8x128xf32> to vector<8x128xbf16>
    %c0_7 = arith.constant 0 : index
    %c0_8 = arith.constant 0 : index
    %19 = vector.load %arg5[%c0_7, %c0_8] : memref<128x128xbf16, #tpu.memory_space<vmem>>, vector<128x128xbf16>
    %cst_9 = arith.constant dense<0.000000e+00> : vector<8x128xf32>
    %20 = tpu.matmul %18, %19, %cst_9 {dimension_numbers = #tpu.dot_dimension_numbers<[1], [0], [0], [1], [0, 0, 1, 1], [], []>} : vector<8x128xbf16>, vector<128x128xbf16>, vector<8x128xf32> -> vector<8x128xf32>
    %c0_10 = arith.constant 0 : index
    %c0_11 = arith.constant 0 : index
    %21 = vector.load %arg6[%c0_10, %c0_11] : memref<1x128xf32, #tpu.memory_space<vmem>>, vector<1x128xf32>
    %22 = vector.broadcast %21 : vector<1x128xf32> to vector<8x128xf32>
    %23 = arith.addf %20, %22 : vector<8x128xf32>
    %cst_12 = arith.constant 0.000000e+00 : f32
    %24 = vector.broadcast %cst_12 : f32 to vector<8x128xf32>
    %25 = arith.maximumf %23, %24 : vector<8x128xf32>
    %26 = arith.truncf %25 : vector<8x128xf32> to vector<8x128xbf16>
    %c0_13 = arith.constant 0 : index
    %c0_14 = arith.constant 0 : index
    %27 = vector.load %arg7[%c0_13, %c0_14] : memref<128x128xbf16, #tpu.memory_space<vmem>>, vector<128x128xbf16>
    %cst_15 = arith.constant dense<0.000000e+00> : vector<8x128xf32>
    %28 = tpu.matmul %26, %27, %cst_15 {dimension_numbers = #tpu.dot_dimension_numbers<[1], [0], [0], [1], [0, 0, 1, 1], [], []>} : vector<8x128xbf16>, vector<128x128xbf16>, vector<8x128xf32> -> vector<8x128xf32>
    %c0_16 = arith.constant 0 : index
    %c0_17 = arith.constant 0 : index
    %29 = vector.load %arg8[%c0_16, %c0_17] : memref<1x128xf32, #tpu.memory_space<vmem>>, vector<1x128xf32>
    %30 = vector.broadcast %29 : vector<1x128xf32> to vector<8x128xf32>
    %31 = arith.addf %28, %30 : vector<8x128xf32>
    %cst_18 = arith.constant 0.000000e+00 : f32
    %32 = vector.broadcast %cst_18 : f32 to vector<8x128xf32>
    %33 = arith.maximumf %31, %32 : vector<8x128xf32>
    %c0_19 = arith.constant 0 : index
    %c0_20 = arith.constant 0 : index
    %34 = vector.load %arg9[%c0_19, %c0_20] : memref<1x128xf32, #tpu.memory_space<vmem>>, vector<1x128xf32>
    %35 = vector.broadcast %34 : vector<1x128xf32> to vector<8x128xf32>
    %36 = arith.mulf %33, %35 : vector<8x128xf32>
    %cst_21 = arith.constant dense<0.000000e+00> : vector<8xf32>
    %37 = vector.multi_reduction <add>, %36, %cst_21 [1] : vector<8x128xf32> to vector<8xf32>
    %38 = vector.shape_cast %37 : vector<8xf32> to vector<8x1xf32>
    %c0_22 = arith.constant 0 : index
    %c0_23 = arith.constant 0 : index
    %39 = vector.load %arg10[%c0_22, %c0_23] : memref<1x1xf32, #tpu.memory_space<vmem>>, vector<1x1xf32>
    %40 = vector.broadcast %39 : vector<1x1xf32> to vector<8x1xf32>
    %41 = arith.addf %38, %40 : vector<8x1xf32>
    %42 = vector.shape_cast %41 : vector<8x1xf32> to vector<8x1xf32>
    %43 = vector.broadcast %42 : vector<8x1xf32> to vector<8x128xf32>
    %c0_24 = arith.constant 0 : index
    %c0_25 = arith.constant 0 : index
    %44 = vector.load %arg11[%c0_24, %c0_25] : memref<8x128xf32, #tpu.memory_space<vmem>>, vector<8x128xf32>
    tpu.vector_store %arg11[%c0_24, %c0_25], %43 {strides = array<i32>} : memref<8x128xf32, #tpu.memory_space<vmem>>, vector<8x128xf32>,
    return
  }
  func.func @transform_0(%arg0: i32) -> (i32, i32) {
    %c0_i32 = arith.constant 0 : i32
    %c0_i32_0 = arith.constant 0 : i32
    return %arg0, %c0_i32 : i32, i32
  }
  func.func @transform_1(%arg0: i32) -> (i32, i32) {
    %c0_i32 = arith.constant 0 : i32
    %c0_i32_0 = arith.constant 0 : i32
    return %arg0, %c0_i32 : i32, i32
  }
  func.func @transform_2(%arg0: i32) -> (i32, i32) {
    %c0_i32 = arith.constant 0 : i32
    %c0_i32_0 = arith.constant 0 : i32
    %c0_i32_1 = arith.constant 0 : i32
    return %c0_i32, %c0_i32_0 : i32, i32
  }
  func.func @transform_3(%arg0: i32) -> (i32, i32) {
    %c0_i32 = arith.constant 0 : i32
    %c0_i32_0 = arith.constant 0 : i32
    %c0_i32_1 = arith.constant 0 : i32
    return %c0_i32, %c0_i32_0 : i32, i32
  }
  func.func @transform_4(%arg0: i32) -> (i32, i32) {
    %c0_i32 = arith.constant 0 : i32
    %c0_i32_0 = arith.constant 0 : i32
    %c0_i32_1 = arith.constant 0 : i32
    return %c0_i32, %c0_i32_0 : i32, i32
  }
  func.func @transform_5(%arg0: i32) -> (i32, i32) {
    %c0_i32 = arith.constant 0 : i32
    %c0_i32_0 = arith.constant 0 : i32
    %c0_i32_1 = arith.constant 0 : i32
    return %c0_i32, %c0_i32_0 : i32, i32
  }
  func.func @transform_6(%arg0: i32) -> (i32, i32) {
    %c0_i32 = arith.constant 0 : i32
    %c0_i32_0 = arith.constant 0 : i32
    %c0_i32_1 = arith.constant 0 : i32
    return %c0_i32, %c0_i32_0 : i32, i32
  }
  func.func @transform_7(%arg0: i32) -> (i32, i32) {
    %c0_i32 = arith.constant 0 : i32
    %c0_i32_0 = arith.constant 0 : i32
    %c0_i32_1 = arith.constant 0 : i32
    return %c0_i32, %c0_i32_0 : i32, i32
  }
  func.func @transform_8(%arg0: i32) -> (i32, i32) {
    %c0_i32 = arith.constant 0 : i32
    %c0_i32_0 = arith.constant 0 : i32
    %c0_i32_1 = arith.constant 0 : i32
    return %c0_i32, %c0_i32_0 : i32, i32
  }
  func.func @transform_9(%arg0: i32) -> (i32, i32) {
    %c0_i32 = arith.constant 0 : i32
    %c0_i32_0 = arith.constant 0 : i32
    %c0_i32_1 = arith.constant 0 : i32
    return %c0_i32, %c0_i32_0 : i32, i32
  }
  func.func @transform_10(%arg0: i32) -> (i32, i32) {
    %c0_i32 = arith.constant 0 : i32
    %c0_i32_0 = arith.constant 0 : i32
    return %arg0, %c0_i32 : i32, i32
  }
}

</mosaic_0001>

<bundles_post_ra>
// kernel: tpu_custom_call.1
= control target key start
LH: loop header
LB: loop body
LE: loop exit
PB: predicated region body
PF: predicated region fallthrough
CT: control target
= control target key end

     0   :  { %s1085_s0 = inlined_call_operand.hbm [shape: f32[8,128], index: 0, kind: input, shape index: {}]   ;;  %s1086_s1 = inlined_call_operand.hbm [shape: f32[8,128], index: 1, kind: input, shape index: {}]   ;;  %s1087_s2 = inlined_call_operand.hbm [shape: bf16[128,512], index: 2, kind: input, shape index: {}]   ;;  %s1088_s3 = inlined_call_operand.vmem [shape: f32[1,512], index: 3, kind: input, shape index: {}]   ;;  %s1089_s4 = inlined_call_operand.hbm [shape: bf16[128,128], index: 4, kind: input, shape index: {}]   ;;  %s1090_s5 = inlined_call_operand.vmem [shape: f32[1,128], index: 5, kind: input, shape index: {}]   ;;  %s1091_s6 = inlined_call_operand.hbm [shape: bf16[128,128], index: 6, kind: input, shape index: {}]   ;;  %s1092_s7 = inlined_call_operand.vmem [shape: f32[1,128], index: 7, kind: input, shape index: {}]   ;;  %s1093_s8 = inlined_call_operand.vmem [shape: f32[1,128], index: 8, kind: input, shape index: {}]   ;;  %s1094_s9 = inlined_call_operand.<no memory space> [shape: f32[1,1], index: 9, kind: input, shape index: {}]   ;;  %s1095_s10 = inlined_call_operand.hbm [shape: f32[8,128], index: 10, kind: output, shape index: {}]  }
   0x1   :  { %v15_v0 = vstv %s1094_s9 }
   0x2   :  { %16 = vst [vmem:[#allocation2] sm:$0x1] %v15_v0 }
   0x3   :  { %17 = vsyncpa [#allocation4], 0 }
   0x4   :  { %18 = vsyncpa [#allocation7], 0 }
   0x5   :  { %19 = vsyncpa [#allocation10], 0  ;;  %s37_s17 = sshll.u32 %s1086_s1, 4  ;;  %s38_s17 = int_to_ptr.hbm [resolvable:$true] %s37_s17 }
   0x6   :  { %20 = vsyncpa [#allocation5], 0  ;;  %s986_s18 = smov [#allocation6]   ;;  %s62_s22 = sshll.u32 %s1089_s4, 4  ;;  %s63_s22 = int_to_ptr.hbm [resolvable:$true] %s62_s22 }
   0x7   :  { %s39_s19 = sshll.u32 %s986_s18, 4  ;;  %s987_s9 = smov [#allocation9]   ;;  %s40_s19 = int_to_ptr.vmem [resolvable:$true] %s39_s19 }
   0x8   :  { %42 = dma.hbm_to_vmem [thread:$0]  %s38_s17, 128, %s40_s19, [#allocation7]  }
   0x9   :  { %s64_s23 = sshll.u32 %s987_s9, 4  ;;  %s988_s24 = smov 64   ;;  %s65_s23 = int_to_ptr.vmem [resolvable:$true] %s64_s23 }
   0xa   :  { %s989_s25 = smov 4   ;;  %s26_s1 = sshll.u32 %s1085_s0, 4  ;;  %s27_s1 = int_to_ptr.hbm [resolvable:$true] %s26_s1 }
   0xb   :  { %70 = dma.hbm_to_vmem [thread:$0]  %s63_s22, 1024, %s65_s23, [#allocation10], %s988_s24, %s988_s24, %s989_s25  }
   0xc   :  { %s990_s28 = smov [#allocation3]   ;;  %s47_s4 = sshll.u32 %s1087_s2, 4  ;;  %s48_s4 = int_to_ptr.hbm [resolvable:$true] %s47_s4 }
   0xd   :  { %s28_s29 = sshll.u32 %s990_s28, 4  ;;  %s991_s12 = smov [#allocation8]   ;;  %s29_s29 = int_to_ptr.vmem [resolvable:$true] %s28_s29 }
   0xe   :  { %31 = dma.hbm_to_vmem [thread:$0]  %s27_s1, 128, %s29_s29, [#allocation4]  }
   0xf   :  { %s49_s13 = sshll.u32 %s991_s12, 4  ;;  %s992_s14 = smov 256   ;;  %s50_s13 = int_to_ptr.vmem [resolvable:$true] %s49_s13 }
  0x10   :  { %s993_s15 = smov 16   ;;  %s77_s0 = sshll.u32 %s1091_s6, 4  ;;  %s78_s0 = int_to_ptr.hbm [resolvable:$true] %s77_s0 }
  0x11   :  { %55 = dma.hbm_to_vmem [thread:$0]  %s48_s4, 4096, %s50_s13, [#allocation7], %s992_s14, %s992_s14, %s993_s15  }
  0x12   :  { %s994_s18 = smov [#allocation11]  }
  0x13   :  { %s79_s19 = sshll.u32 %s994_s18, 4  ;;  %s80_s19 = int_to_ptr.vmem [resolvable:$true] %s79_s19 }
  0x14   :  { %85 = dma.hbm_to_vmem [thread:$0]  %s78_s0, 1024, %s80_s19, [#allocation10], %s988_s24, %s988_s24, %s989_s25  }
  0x15   :  { %978 = dma.done.wait [#allocation4], 128  }
  0x16   :  { %979 = vsyncadd [#allocation4], 4294967168 }
  0x17   :  { %980 = dma.done.wait [#allocation7], 4224  }
  0x18   :  { %981 = vsyncadd [#allocation7], 4294963072 }
  0x19   :  { %982 = dma.done.wait [#allocation10], 2048  }
  0x1a   :  { %983 = vsyncadd [#allocation10], 4294965248  ;;  %v692_v1 = vld [vmem:[#allocation8 + $0xe0] sm:$0xf]  ;;  %v800_v2 = vld [vmem:[#allocation8 + $0xec] sm:$0xf0] }
  0x1b   :  { %v798_v3 = vld [vmem:[#allocation8 + $0xe4] sm:$0xf]  ;;  %v693_v4 = vor.u32 %v800_v2, %v692_v1  ;;  %v694_v5 = vld [vmem:[#allocation8 + $0xf0] sm:$0xf0]  ;;  %v700_v6 = vld [vmem:[#allocation8 + $0xe8] sm:$0xf] }
  0x1c   :  { %v801_v7 = vld [vmem:[#allocation8 + $0xf4] sm:$0xf0]  ;;  %v697_v8 = vor.u32 %v798_v3, %v694_v5  ;;  %v799_v10 = vld [vmem:[#allocation8 + $0xec] sm:$0xf]  ;;  %v702_v11 = vld [vmem:[#allocation8 + $0xf8] sm:$0xf0] }
  0x1d   :  { %v701_v9 = vor.u32 %v801_v7, %v700_v6  ;;  %v676_v12 = vld [vmem:[#allocation8 + $0xc0] sm:$0xf]  ;;  %317 = vmatpush.bf16.msra.mxu0 %v693_v4  ;;  %v705_v13 = vor.u32 %v799_v10, %v702_v11  ;;  %v796_v14 = vld [vmem:[#allocation8 + $0xcc] sm:$0xf0]  ;;  %v794_v15 = vld [vmem:[#allocation8 + $0xc4] sm:$0xf] }
  0x1e   :  { %v678_v16 = vld [vmem:[#allocation8 + $0xd0] sm:$0xf0]  ;;  %330 = vmatpush.bf16.msra.mxu1 %v697_v8  ;;  %v677_v17 = vor.u32 %v796_v14, %v676_v12  ;;  %v684_v19 = vld [vmem:[#allocation8 + $0xc8] sm:$0xf]  ;;  %v797_v20 = vld [vmem:[#allocation8 + $0xd4] sm:$0xf0] }
  0x1f   :  { %343 = vmatpush.bf16.msra.mxu2 %v701_v9  ;;  %v681_v18 = vor.u32 %v794_v15, %v678_v16  ;;  %v795_v21 = vld [vmem:[#allocation8 + $0xcc] sm:$0xf]  ;;  %356 = vmatpush.bf16.msra.mxu3 %v705_v13  ;;  %v685_v22 = vor.u32 %v797_v20, %v684_v19  ;;  %v686_v23 = vld [vmem:[#allocation8 + $0xd8] sm:$0xf0]  ;;  %v660_v24 = vld [vmem:[#allocation8 + $0xa0] sm:$0xf] }
  0x20   :  { %v792_v25 = vld [vmem:[#allocation8 + $0xac] sm:$0xf0]  ;;  %v689_v26 = vor.u32 %v795_v21, %v686_v23  ;;  %v790_v27 = vld [vmem:[#allocation8 + $0xa4] sm:$0xf]  ;;  %v662_v28 = vld [vmem:[#allocation8 + $0xb0] sm:$0xf0] }
  0x21   :  { %v668_v29 = vld [vmem:[#allocation8 + $0xa8] sm:$0xf]  ;;  %318 = vmatpush.bf16.msra.mxu0 %v677_v17  ;;  %v661_v30 = vor.u32 %v792_v25, %v660_v24  ;;  %v793_v31 = vld [vmem:[#allocation8 + $0xb4] sm:$0xf0]  ;;  %v791_v32 = vld [vmem:[#allocation8 + $0xac] sm:$0xf]  ;;  %v665_v34 = vor.u32 %v790_v27, %v662_v28 }
  0x22   :  { %v670_v33 = vld [vmem:[#allocation8 + $0xb8] sm:$0xf0]  ;;  %331 = vmatpush.bf16.msra.mxu1 %v681_v18  ;;  %v669_v35 = vor.u32 %v793_v31, %v668_v29  ;;  %v644_v36 = vld [vmem:[#allocation8 + $0x80] sm:$0xf]  ;;  %v788_v37 = vld [vmem:[#allocation8 + $0x8c] sm:$0xf0] }
  0x23   :  { %344 = vmatpush.bf16.msra.mxu2 %v685_v22  ;;  %v786_v38 = vld [vmem:[#allocation8 + $0x84] sm:$0xf]  ;;  %357 = vmatpush.bf16.msra.mxu3 %v689_v26  ;;  %v673_v39 = vor.u32 %v791_v32, %v670_v33  ;;  %v646_v40 = vld [vmem:[#allocation8 + $0x90] sm:$0xf0]  ;;  %v652_v41 = vld [vmem:[#allocation8 + $0x88] sm:$0xf]  ;;  %v645_v45 = vor.u32 %v788_v37, %v644_v36 }
  0x24   :  { %v789_v42 = vld [vmem:[#allocation8 + $0x94] sm:$0xf0]  ;;  %v787_v43 = vld [vmem:[#allocation8 + $0x8c] sm:$0xf]  ;;  %v654_v44 = vld [vmem:[#allocation8 + $0x98] sm:$0xf0]  ;;  %v649_v46 = vor.u32 %v786_v38, %v646_v40 }
  0x25   :  { %319 = vmatpush.bf16.msra.mxu0 %v661_v30  ;;  %v653_v47 = vor.u32 %v789_v42, %v652_v41  ;;  %v628_v48 = vld [vmem:[#allocation8 + $0x60] sm:$0xf]  ;;  %v784_v49 = vld [vmem:[#allocation8 + $0x6c] sm:$0xf0]  ;;  %v782_v50 = vld [vmem:[#allocation8 + $0x64] sm:$0xf]  ;;  %v657_v51 = vor.u32 %v787_v43, %v654_v44 }
  0x26   :  { %332 = vmatpush.bf16.msra.mxu1 %v665_v34  ;;  %v630_v52 = vld [vmem:[#allocation8 + $0x70] sm:$0xf0]  ;;  %v636_v53 = vld [vmem:[#allocation8 + $0x68] sm:$0xf]  ;;  %v785_v54 = vld [vmem:[#allocation8 + $0x74] sm:$0xf0]  ;;  %v629_v57 = vor.u32 %v784_v49, %v628_v48 }
  0x27   :  { %345 = vmatpush.bf16.msra.mxu2 %v669_v35  ;;  %358 = vmatpush.bf16.msra.mxu3 %v673_v39  ;;  %v783_v55 = vld [vmem:[#allocation8 + $0x6c] sm:$0xf]  ;;  %v638_v56 = vld [vmem:[#allocation8 + $0x78] sm:$0xf0]  ;;  %v633_v58 = vor.u32 %v782_v50, %v630_v52  ;;  %v637_v59 = vor.u32 %v785_v54, %v636_v53  ;;  %v612_v60 = vld [vmem:[#allocation8 + $0x40] sm:$0xf] }
  0x28   :  { %v780_v61 = vld [vmem:[#allocation8 + $0x4c] sm:$0xf0]  ;;  %v778_v62 = vld [vmem:[#allocation8 + $0x44] sm:$0xf]  ;;  %v641_v63 = vor.u32 %v783_v55, %v638_v56  ;;  %v614_v0 = vld [vmem:[#allocation8 + $0x50] sm:$0xf0] }
  0x29   :  { %320 = vmatpush.bf16.msra.mxu0 %v645_v45  ;;  %v620_v1 = vld [vmem:[#allocation8 + $0x48] sm:$0xf]  ;;  %v781_v2 = vld [vmem:[#allocation8 + $0x54] sm:$0xf0]  ;;  %v779_v3 = vld [vmem:[#allocation8 + $0x4c] sm:$0xf]  ;;  %v613_v5 = vor.u32 %v780_v61, %v612_v60  ;;  %v617_v6 = vor.u32 %v778_v62, %v614_v0 }
  0x2a   :  { %333 = vmatpush.bf16.msra.mxu1 %v649_v46  ;;  %v622_v4 = vld [vmem:[#allocation8 + $0x58] sm:$0xf0]  ;;  %v621_v7 = vor.u32 %v781_v2, %v620_v1  ;;  %v596_v8 = vld [vmem:[#allocation8 + $0x20] sm:$0xf]  ;;  %v776_v9 = vld [vmem:[#allocation8 + $0x2c] sm:$0xf0] }
  0x2b   :  { %346 = vmatpush.bf16.msra.mxu2 %v653_v47  ;;  %359 = vmatpush.bf16.msra.mxu3 %v657_v51  ;;  %v774_v10 = vld [vmem:[#allocation8 + $0x24] sm:$0xf]  ;;  %v625_v11 = vor.u32 %v779_v3, %v622_v4  ;;  %v598_v12 = vld [vmem:[#allocation8 + $0x30] sm:$0xf0]  ;;  %v604_v13 = vld [vmem:[#allocation8 + $0x28] sm:$0xf]  ;;  %v597_v18 = vor.u32 %v776_v9, %v596_v8 }
  0x2c   :  { %v777_v14 = vld [vmem:[#allocation8 + $0x34] sm:$0xf0]  ;;  %v775_v15 = vld [vmem:[#allocation8 + $0x2c] sm:$0xf]  ;;  %v606_v16 = vld [vmem:[#allocation8 + $0x38] sm:$0xf0]  ;;  %v601_v21 = vor.u32 %v774_v10, %v598_v12 }
  0x2d   :  { %321 = vmatpush.bf16.msra.mxu0 %v629_v57  ;;  %v580_v17 = vld [vmem:[#allocation8] sm:$0xf]  ;;  %v772_v19 = vld [vmem:[#allocation8 + $0xc] sm:$0xf0]  ;;  %v770_v20 = vld [vmem:[#allocation8 + $0x4] sm:$0xf]  ;;  %v605_v22 = vor.u32 %v777_v14, %v604_v13  ;;  %v609_v24 = vor.u32 %v775_v15, %v606_v16 }
  0x2e   :  { %334 = vmatpush.bf16.msra.mxu1 %v633_v58  ;;  %v582_v23 = vld [vmem:[#allocation8 + $0x10] sm:$0xf0]  ;;  %v588_v25 = vld [vmem:[#allocation8 + $0x8] sm:$0xf]  ;;  %v773_v26 = vld [vmem:[#allocation8 + $0x14] sm:$0xf0]  ;;  %v581_v29 = vor.u32 %v772_v19, %v580_v17 }
  0x2f   :  { %347 = vmatpush.bf16.msra.mxu2 %v637_v59  ;;  %360 = vmatpush.bf16.msra.mxu3 %v641_v63  ;;  %v771_v27 = vld [vmem:[#allocation8 + $0xc] sm:$0xf]  ;;  %v590_v28 = vld [vmem:[#allocation8 + $0x18] sm:$0xf0]  ;;  %v585_v31 = vor.u32 %v770_v20, %v582_v23  ;;  %v589_v32 = vor.u32 %v773_v26, %v588_v25  ;;  %v808_v36 = vld [vmem:[#allocation9 + $0x30] sm:$0xff]  ;;  %v995_v25 = vmov 0  }
  0x30   :  { %v113_v30 = vld [vmem:[#allocation6] sm:$0xff]  ;;  %v593_v33 = vor.u32 %v771_v27, %v590_v28  ;;  %v807_v37 = vld [vmem:[#allocation9 + $0x28] sm:$0xff]  ;;  %v806_v38 = vld [vmem:[#allocation9 + $0x20] sm:$0xff]  ;;  %829 = vset.pattern.permute.xlu0 %v995_v25  ;;  %s566_s26 = sshll.u32 %s1095_s10, 4  ;;  %s567_s26 = int_to_ptr.hbm [resolvable:$true] %s566_s26 }
  0x31   :  { %322 = vmatpush.bf16.msra.mxu0 %v613_v5  ;;  %v809_v34 = vld [vmem:[#allocation9 + $0x38] sm:$0xff]  ;;  %v114_v35 = vpack.c.bf16 %v113_v30, %v113_v30  ;;  %v804_v40 = vld [vmem:[#allocation9 + $0x10] sm:$0xff]  ;;  %v803_v41 = vld [vmem:[#allocation9 + $0x8] sm:$0xff] }
  0x32   :  { %335 = vmatpush.bf16.msra.mxu1 %v617_v6  ;;  %v805_v39 = vld [vmem:[#allocation9 + $0x18] sm:$0xff]  ;;  %v802_v42 = vld [vmem:[#allocation9] sm:$0xff]  ;;  %v816_v44 = vld [vmem:[#allocation11 + $0x30] sm:$0xff] }
  0x33   :  { %348 = vmatpush.bf16.msra.mxu2 %v621_v7  ;;  %361 = vmatpush.bf16.msra.mxu3 %v625_v11  ;;  %v817_v43 = vld [vmem:[#allocation11 + $0x38] sm:$0xff]  ;;  %v815_v45 = vld [vmem:[#allocation11 + $0x28] sm:$0xff]  ;;  %v814_v47 = vld [vmem:[#allocation11 + $0x20] sm:$0xff] }
  0x34   :  { %v147_v46 = vld [vmem:[%s1088_s3] sm:$0xf]  ;;  %v813_v52 = vld [vmem:[#allocation11 + $0x18] sm:$0xff]  ;;  %v810_v11 = vld [vmem:[#allocation11] sm:$0xff] }
  0x35   :  { %323 = vmatpush.bf16.msra.mxu0 %v597_v18  ;;  %v149_v48 = vperm.slane %v147_v46, 0  ;;  %v150_v49 = vperm.slane %v147_v46, 1  ;;  %v112_v50 = vld [vmem:[#allocation3] sm:$0xff]  ;;  %v151_v57 = vperm.slane %v147_v46, 2  ;;  %v152_v60 = vperm.slane %v147_v46, 3  ;;  %v811_v10 = vld [vmem:[#allocation11 + $0x8] sm:$0xff] }
  0x36   :  { %336 = vmatpush.bf16.msra.mxu1 %v601_v21  ;;  %v812_v58 = vld [vmem:[#allocation11 + $0x10] sm:$0xff]  ;;  %v830_v12 = vld [vmem:[%s1090_s5] ss:$0 sm:$0xff]  ;;  %s996_s5 = smov [#allocation12]  }
  0x37   :  { %349 = vmatpush.bf16.msra.mxu2 %v605_v22  ;;  %362 = vmatpush.bf16.msra.mxu3 %v609_v24  ;;  %v831_v18 = vld [vmem:[%s1092_s7] ss:$0 sm:$0xff]  ;;  %s564_s24 = sshll.u32 %s996_s5, 4  ;;  %s565_s24 = int_to_ptr.vmem [resolvable:$true] %s564_s24 }
  0x38   :  { %v832_v21 = vld [vmem:[%s1093_s8] ss:$0 sm:$0xff] }
  0x39   :  { %324 = vmatpush.bf16.msra.mxu0 %v581_v29  ;;  %v833_v26 = vld [vmem:[#allocation2] ss:$0 sm:$0xff] }
  0x3a   :  { %337 = vmatpush.bf16.msra.mxu1 %v585_v31 }
  0x3b   :  { %350 = vmatpush.bf16.msra.mxu2 %v589_v32  ;;  %363 = vmatpush.bf16.msra.mxu3 %v593_v33 }
  0x3c   :  { %325 = vmatmul.bf16.vlgmr.msra.gmra.mxu0 %v114_v35 }
  0x3d   :  { %444 = vmatpush.bf16.msrb.mxu0 %v809_v34  ;;  %338 = vmatmul.bf16.vlgmr.msra.gmra.mxu1 %v114_v35 }
  0x3e   :  { %351 = vmatmul.bf16.vlgmr.msra.gmra.mxu2 %v114_v35  ;;  %364 = vmatmul.bf16.vlgmr.msra.gmra.mxu3 %v114_v35 }
  0x3f   :  { %527 = vmatpush.bf16.msrb.mxu1 %v817_v43 }
  0x41   :  { %445 = vmatpush.bf16.msrb.mxu0 %v808_v36 }
  0x43   :  { %528 = vmatpush.bf16.msrb.mxu1 %v816_v44 }
  0x45   :  { %446 = vmatpush.bf16.msrb.mxu0 %v807_v37 }
  0x47   :  { %529 = vmatpush.bf16.msrb.mxu1 %v815_v45 }
  0x49   :  { %447 = vmatpush.bf16.msrb.mxu0 %v806_v38 }
  0x4b   :  { %530 = vmatpush.bf16.msrb.mxu1 %v814_v47 }
  0x4d   :  { %448 = vmatpush.bf16.msrb.mxu0 %v805_v39 }
  0x4f   :  { %531 = vmatpush.bf16.msrb.mxu1 %v813_v52 }
  0x51   :  { %449 = vmatpush.bf16.msrb.mxu0 %v804_v40 }
  0x53   :  { %532 = vmatpush.bf16.msrb.mxu1 %v812_v58 }
  0x55   :  { %450 = vmatpush.bf16.msrb.mxu0 %v803_v41 }
  0x57   :  { %533 = vmatpush.bf16.msrb.mxu1 %v811_v10 }
  0x59   :  { %451 = vmatpush.bf16.msrb.mxu0 %v802_v42 }
  0x5b   :  { %534 = vmatpush.bf16.msrb.mxu1 %v810_v11 }
  0xb9   :  { %v326_v51 = vpop.f32.mrf.mxu0 }
  0xba   :  { %v327_v53 = vadd.f32 %v326_v51, %v149_v48  ;;  %v339_v54 = vpop.f32.mrf.mxu1 }
  0xbb   :  { %v340_v55 = vadd.f32 %v339_v54, %v150_v49 }
  0xbc   :  { %v369_v56 = vmul.f32 %v327_v53, %v112_v50 }
  0xbe   :  { %v370_v59 = vadd.f32 %v369_v56, %v340_v55 }
  0xc0   :  { %v371_v62 = vadd.f32 %v370_v59, %v112_v50 }
  0xc1   :  { %v352_v61 = vpop.f32.mrf.mxu2  ;;  %v365_v0 = vpop.f32.mrf.mxu3 }
  0xc2   :  { %v353_v63 = vadd.f32 %v352_v61, %v151_v57  ;;  %v328_v1 = vpop.f32.mrf.mxu0  ;;  %v366_v2 = vadd.f32 %v365_v0, %v152_v60  ;;  %v341_v3 = vpop.f32.mrf.mxu1 }
  0xc4   :  { %v372_v4 = vmul.f32 %v371_v62, %v353_v63 }
  0xc6   :  { %v373_v5 = vadd.f32 %v372_v4, %v366_v2 }
  0xc8   :  { %v374_v6 = vadd.f32 %v373_v5, %v371_v62 }
  0xc9   :  { %v354_v7 = vpop.f32.mrf.mxu2  ;;  %v367_v8 = vpop.f32.mrf.mxu3 }
  0xca   :  { %v375_v9 = vpack.c.bf16 %v374_v6, %v374_v6 }
  0xcc   :  { %452 = vmatmul.bf16.vlgmr.msrb.gmra.mxu0 %v375_v9 }
 0x149   :  { %v453_v13 = vpop.f32.mrf.mxu0 }
 0x14a   :  { %v454_v14 = vadd.f32 %v830_v12, %v453_v13 }
 0x14c   :  { %v457_v15 = vmax.f32 %v454_v14, 0.0 }
 0x14e   :  { %v458_v16 = vpack.c.bf16 %v457_v15, %v457_v15 }
 0x150   :  { %535 = vmatmul.bf16.vlgmr.msrb.gmra.mxu1 %v458_v16 }
 0x151   :  { %v455_v17 = vpop.f32.mrf.mxu0 }
 0x1cd   :  { %v536_v19 = vpop.f32.mrf.mxu1 }
 0x1ce   :  { %v537_v20 = vadd.f32 %v831_v18, %v536_v19 }
 0x1d0   :  { %v540_v22 = vmax.f32 %v537_v20, 0.0 }
 0x1d2   :  { %v545_v23 = vmul.f32 %v832_v21, %v540_v22 }
 0x1d4   :  { %546 = vadd.xlane.f32.xlu0 %v545_v23 }
 0x1d5   :  { %v538_v24 = vpop.f32.mrf.mxu1 }
 0x247   :  { %v547_v27 = vpop.xlane.xlu0 %546 }
 0x248   :  { %v552_v28 = vadd.f32 %v833_v26, %v547_v27 }
 0x24a   :  { %555 = vperm.xlu0 %829, %v552_v28  }
 0x2bc   :  { %v556_v29 = vpop.permute.xlu0 %555 }
 0x2bd   :  { %558 = vst [vmem:[#allocation12] sm:$0xff] %v556_v29 }
 0x2be   :  { %569 = dma.vmem_to_hbm [thread:$0]  %s565_s24, 128, %s567_s26, [#allocation5]  }
 0x2bf   :  { %984 = dma.done.wait [#allocation5], 128  }
 0x2c0   :  { %985 = vsyncadd [#allocation5], 4294967168 }
 0x2c1   :  { %574 = vsyncpa [#allocation4], 1 }
 0x2c2   :  { %575 = vsyncpa [#allocation7], 1 }
 0x2c3   :  { %576 = vsyncpa [#allocation10], 1 }
 0x2c4   :  { %577 = vsyncpa [#allocation5], 1 }

</bundles_post_ra>
